<compile_context>
chip_gen: v7x
topology: tpu7x:2x2x1
jax: 0.10.0
libtpu: 0.0.40
codegen_flags: <defaults>
</compile_context>

<pallas_src>
import jax
import jax.numpy as jnp
from jax.experimental import pallas as pl
from jax.experimental.pallas import tpu as pltpu

BN_EPS = 1e-5


def _round_up(n, m):
    return ((n + m - 1) // m) * m


def _vmem_capacity_bytes():
    """Physical per-core VMEM; conservative 64 MiB (v7x) if the query is unavailable."""
    try:
        info = pltpu.get_tpu_info()
        for name in ("vmem_capacity_bytes", "vmem_size_bytes", "vmem_bytes"):
            cap = getattr(info, name, None)
            if cap:
                return int(cap)
    except Exception:
        pass
    return 64 << 20


# ---------------------------------- kernels ----------------------------------

def _resident_kernel(x_ref, w1_ref, b1_ref, w2_ref, b2_ref, o_ref):
    """One (TB, Fp) batch tile; full W1'/W2' stay VMEM-resident across the grid."""
    x = x_ref[...]
    # fc1 (BN already folded into W1'/b1') + ReLU; f32 MXU accumulation.
    h = jnp.dot(x.astype(w1_ref.dtype), w1_ref[...],
                preferred_element_type=jnp.float32) + b1_ref[...]
    h = jnp.maximum(h, 0.0)
    # TODO(synk): train-mode Dropout(0.2) would mask h/y via pltpu.prng_seed +
    # pltpu.prng_random_bits; eval mode is identity.
    y = jnp.dot(h.astype(w2_ref.dtype), w2_ref[...],
                preferred_element_type=jnp.float32) + b2_ref[...]
    o_ref[...] = (x.astype(jnp.float32) + y).astype(o_ref.dtype)


def _hidden_tiled_kernel(x_ref, w1_ref, b1_ref, w2_ref, b2_ref, o_ref, acc_ref):
    """Grid = (batch tiles, hidden tiles); the hidden axis reduces into acc_ref."""
    h_idx = pl.program_id(1)

    @pl.when(h_idx == 0)
    def _():
        acc_ref[...] = jnp.zeros_like(acc_ref)

    x = x_ref[...]
    h = jnp.dot(x.astype(w1_ref.dtype), w1_ref[...],
                preferred_element_type=jnp.float32) + b1_ref[...]
    h = jnp.maximum(h, 0.0)
    acc_ref[...] += jnp.dot(h.astype(w2_ref.dtype), w2_ref[...],
                            preferred_element_type=jnp.float32)

    @pl.when(h_idx == pl.num_programs(1) - 1)
    def _():
        o_ref[...] = (x.astype(jnp.float32) + acc_ref[...] + b2_ref[...]).astype(o_ref.dtype)


# ---------------------------------- wrapper -----------------------------------

def resnet_block(x, gamma, beta, running_mean, running_var, w1, b1, w2, b2, *,
                 matmul_dtype=jnp.float32, io_dtype=jnp.float32,
                 block_b=512, block_h=None):
    """x: (B, F); w1: (H, F), b1: (H,), w2: (F, H), b2: (F,)  (PyTorch Linear layout)."""
    B, F = x.shape
    H, F_in = w1.shape
    assert F_in == F, "fc1 expects in_features == x.shape[-1]"
    assert w2.shape[1] == H, "fc2 in_features must equal fc1 out_features"
    assert w2.shape[0] == F, "residual add requires fc2 out_features == in_features"

    f32 = jnp.float32

    # ---- Fold eval-mode BatchNorm into fc1 (one-time, O(F*H)) ----
    s = gamma.astype(f32) * jax.lax.rsqrt(running_var.astype(f32) + BN_EPS)   # (F,)
    t = beta.astype(f32) - running_mean.astype(f32) * s                        # (F,)
    w1p = w1.T.astype(f32) * s[:, None]                   # (F, H) == diag(s) @ W1^T
    b1p = t @ w1.T.astype(f32) + b1.astype(f32)           # (H,)
    w2p = w2.T.astype(f32)                                 # (H, F)
    b2p = b2.astype(f32)                                   # (F,)

    # ---- Padded / tiled geometry ----
    Fp = _round_up(F, 128)
    Hmin = _round_up(H, 128)

    TB = min(block_b, _round_up(B, 8))
    # v7x: make sure there are >= 2 batch tiles (one per TensorCore) whenever B allows.
    if B >= 16 and _round_up(B, TB) // TB < 2:
        TB = _round_up((B + 1) // 2, 8)
    Bp = _round_up(B, TB)

    w_itm = jnp.dtype(matmul_dtype).itemsize
    io_itm = jnp.dtype(io_dtype).itemsize

    def vmem_need(th, n_wbuf, with_acc):
        weights = n_wbuf * (2 * Fp * th * w_itm + (th + Fp) * 4)   # W1/W2 slices + biases
        io = 2 * TB * Fp * io_itm * 2                               # double-buffered x in / o out
        acc = TB * Fp * 4 if with_acc else 0                        # f32 accumulator scratch
        inter = TB * th * (4 + w_itm) + 2 * TB * Fp * 4             # h (f32 + cast), y/residual
        return weights + io + acc + inter

    vmem_ceiling = int(0.85 * _vmem_capacity_bytes())               # per-generation ceiling

    if block_h is not None:
        TH = max(128, _round_up(min(block_h, Hmin), 128))
    elif vmem_need(Hmin, 1, False) <= vmem_ceiling:
        TH = Hmin                                                   # fully resident weights
    else:
        TH = max(128, _round_up(min(512, Hmin), 128))
        while TH > 128 and vmem_need(TH, 2, True) > vmem_ceiling:
            TH -= 128
    Hp = _round_up(H, TH)
    n_h = Hp // TH
    resident = n_h == 1

    # ---- Pad operands (zeros are inert: padded H columns/rows contribute nothing) ----
    x_p = jnp.pad(x.astype(f32), ((0, Bp - B), (0, Fp - F))).astype(io_dtype)
    w1_p = jnp.pad(w1p, ((0, Fp - F), (0, Hp - H))).astype(matmul_dtype)
    b1_p = jnp.pad(b1p, (0, Hp - H)).reshape(1, Hp)
    w2_p = jnp.pad(w2p, ((0, Hp - H), (0, Fp - F))).astype(matmul_dtype)
    b2_p = jnp.pad(b2p, (0, Fp - F)).reshape(1, Fp)

    cost = pl.CostEstimate(
        flops=4 * Bp * Fp * Hp,                                     # two matmuls
        transcendentals=0,
        bytes_accessed=2 * Bp * Fp * io_itm + 2 * Fp * Hp * w_itm,
    )

    def _spec(shape, index_map, mode=None):
        if mode is None:
            return pl.BlockSpec(shape, index_map)
        return pl.BlockSpec(shape, index_map, pipeline_mode=mode)

    def build_call(single_buffer_hint):
        mode = pl.Buffered(1) if single_buffer_hint else None       # constant-index operands
        n_wbuf = 1 if (resident and single_buffer_hint) else 2
        vmem_limit = int(min(max(vmem_need(TH, n_wbuf, not resident) + (8 << 20), 32 << 20),
                             vmem_ceiling))
        if resident:
            grid_spec = pltpu.PrefetchScalarGridSpec(
                num_scalar_prefetch=0,
                grid=(Bp // TB,),
                in_specs=[
                    _spec((TB, Fp), lambda i: (i, 0)),              # x batch tile (pipelined)
                    _spec((Fp, Hp), lambda i: (0, 0), mode),        # W1' (resident)
                    _spec((1, Hp), lambda i: (0, 0), mode),         # b1' (resident)
                    _spec((Hp, Fp), lambda i: (0, 0), mode),        # W2' (resident)
                    _spec((1, Fp), lambda i: (0, 0), mode),         # b2  (resident)
                ],
                out_specs=pl.BlockSpec((TB, Fp), lambda i: (i, 0)),
            )
            kernel, dim_sem = _resident_kernel, ("parallel",)
        else:
            grid_spec = pltpu.PrefetchScalarGridSpec(
                num_scalar_prefetch=0,
                grid=(Bp // TB, n_h),
                in_specs=[
                    _spec((TB, Fp), lambda i, h: (i, 0)),           # x held across hidden steps
                    _spec((Fp, TH), lambda i, h: (0, h)),           # W1' hidden slice (pipelined)
                    _spec((1, TH), lambda i, h: (0, h)),            # b1' hidden slice
                    _spec((TH, Fp), lambda i, h: (h, 0)),           # W2' hidden slice (pipelined)
                    _spec((1, Fp), lambda i, h: (0, 0), mode),      # b2 (resident)
                ],
                out_specs=pl.BlockSpec((TB, Fp), lambda i, h: (i, 0)),
                scratch_shapes=[pltpu.VMEM((TB, Fp), jnp.float32)],
            )
            kernel, dim_sem = _hidden_tiled_kernel, ("parallel", "arbitrary")
        return pl.pallas_call(
            kernel,
            out_shape=jax.ShapeDtypeStruct((Bp, Fp), io_dtype),
            grid_spec=grid_spec,
            compiler_params=pltpu.CompilerParams(
                dimension_semantics=dim_sem,
                vmem_limit_bytes=vmem_limit,
            ),
            cost_estimate=cost,
        )

    try:
        out = build_call(True)(x_p, w1_p, b1_p, w2_p, b2_p)
    except Exception:
        # pl.Buffered(1) hint not supported by this jax/libtpu combo -> default buffering.
        out = build_call(False)(x_p, w1_p, b1_p, w2_p, b2_p)
    return out[:B, :F]


# ---------------------------------- testing -----------------------------------

def _reference(x, gamma, beta, rm, rv, w1, b1, w2, b2):
    xn = (x - rm) / jnp.sqrt(rv + BN_EPS) * gamma + beta
    h = jnp.maximum(xn @ w1.T + b1, 0.0)
    y = h @ w2.T + b2
    return x + y


def _make_inputs(key, B, F):
    ks = jax.random.split(key, 8)
    x = jax.random.normal(ks[0], (B, F), dtype=jnp.float32)
    gamma = 1.0 + 0.1 * jax.random.normal(ks[1], (F,), dtype=jnp.float32)
    beta = 0.1 * jax.random.normal(ks[2], (F,), dtype=jnp.float32)
    rm = 0.05 * jax.random.normal(ks[3], (F,), dtype=jnp.float32)
    rv = 1.0 + 0.1 * jax.nn.softplus(jax.random.normal(ks[4], (F,), dtype=jnp.float32))
    w1 = 0.1 * jax.random.normal(ks[5], (F, F), dtype=jnp.float32)   # PyTorch (out, in)
    b1 = 0.01 * jax.random.normal(ks[6], (F,), dtype=jnp.float32)
    w2 = 0.1 * jax.random.normal(ks[7], (F, F), dtype=jnp.float32)
    b2 = jnp.linspace(-0.01, 0.01, F, dtype=jnp.float32)
    return (x, gamma, beta, rm, rv, w1, b1, w2, b2)


if __name__ == "__main__":
    key = jax.random.PRNGKey(0)
    k1, k2 = jax.random.split(key)

    # 1) Small shape, fully-resident single-buffered weights, exact f32 path.
    args = _make_inputs(k1, B=8, F=32)
    ref = _reference(*args)
    out = jax.block_until_ready(resnet_block(*args))
    assert out.shape == ref.shape
    assert jnp.allclose(out, ref, atol=1e-4, rtol=1e-4), "f32 resident path mismatch"

    # 2) bf16 MXU operands (f32 accumulation), loose tolerance.
    out_bf16 = jax.block_until_ready(resnet_block(*args, matmul_dtype=jnp.bfloat16))
    assert jnp.allclose(out_bf16, ref, atol=5e-2, rtol=5e-2), "bf16 matmul path mismatch"

    # 3) Hidden-dim tiling fallback (forced via block_h) + >=2 batch tiles.
    args2 = _make_inputs(k2, B=40, F=160)
    ref2 = _reference(*args2)
    out2 = jax.block_until_ready(resnet_block(*args2, block_h=128))
    assert out2.shape == ref2.shape
    assert jnp.allclose(out2, ref2, atol=2e-4, rtol=2e-4), "hidden-tiled path mismatch"

    # 4) bf16 x/o HBM traffic (for HBM-bound shapes), very loose tolerance.
    out_io = jax.block_until_ready(
        resnet_block(*args, matmul_dtype=jnp.bfloat16, io_dtype=jnp.bfloat16))
    assert jnp.allclose(out_io.astype(jnp.float32), ref, atol=1e-1, rtol=1e-1), \
        "bf16 io path mismatch"

    print("KERNEL_OK")
</pallas_src>

<mosaic_0001>
module attributes {stable_mosaic.version = 11 : i64} {
  func.func @_resident_kernel(%arg0: i32, %arg1: memref<8x128xf32, #tpu.memory_space<vmem>>, %arg2: memref<128x128xf32, #tpu.memory_space<vmem>>, %arg3: memref<1x128xf32, #tpu.memory_space<vmem>>, %arg4: memref<128x128xf32, #tpu.memory_space<vmem>>, %arg5: memref<1x128xf32, #tpu.memory_space<vmem>>, %arg6: memref<8x128xf32, #tpu.memory_space<vmem>>) attributes {dimension_semantics = [#tpu.dimension_semantics<parallel>], iteration_bounds = array<i64: 1>, scalar_prefetch = 0 : i64, scratch_operands = 0 : i64, tpu.core_type = #tpu.core_type<tc>, window_params = [{transform_indices = @transform_0, window_bounds = array<i64: 8, 128>}, {pipeline_mode = #tpu.pipeline_mode<synchronous>, transform_indices = @transform_1, window_bounds = array<i64: 128, 128>}, {pipeline_mode = #tpu.pipeline_mode<synchronous>, transform_indices = @transform_2, window_bounds = array<i64: 1, 128>}, {pipeline_mode = #tpu.pipeline_mode<synchronous>, transform_indices = @transform_3, window_bounds = array<i64: 128, 128>}, {pipeline_mode = #tpu.pipeline_mode<synchronous>, transform_indices = @transform_4, window_bounds = array<i64: 1, 128>}, {transform_indices = @transform_5, window_bounds = array<i64: 8, 128>}]} {
    %c0 = arith.constant 0 : index
    %c0_0 = arith.constant 0 : index
    %0 = vector.load %arg1[%c0, %c0_0] : memref<8x128xf32, #tpu.memory_space<vmem>>, vector<8x128xf32>
    %c0_1 = arith.constant 0 : index
    %c0_2 = arith.constant 0 : index
    %1 = vector.load %arg2[%c0_1, %c0_2] : memref<128x128xf32, #tpu.memory_space<vmem>>, vector<128x128xf32>
    %cst = arith.constant dense<0.000000e+00> : vector<8x128xf32>
    %2 = tpu.matmul %0, %1, %cst {dimension_numbers = #tpu.dot_dimension_numbers<[1], [0], [0], [1], [0, 0, 1, 1], [], []>} : vector<8x128xf32>, vector<128x128xf32>, vector<8x128xf32> -> vector<8x128xf32>
    %c0_3 = arith.constant 0 : index
    %c0_4 = arith.constant 0 : index
    %3 = vector.load %arg3[%c0_3, %c0_4] : memref<1x128xf32, #tpu.memory_space<vmem>>, vector<1x128xf32>
    %4 = vector.broadcast %3 : vector<1x128xf32> to vector<8x128xf32>
    %5 = arith.addf %2, %4 : vector<8x128xf32>
    %cst_5 = arith.constant 0.000000e+00 : f32
    %6 = vector.broadcast %cst_5 : f32 to vector<8x128xf32>
    %7 = arith.maximumf %5, %6 : vector<8x128xf32>
    %c0_6 = arith.constant 0 : index
    %c0_7 = arith.constant 0 : index
    %8 = vector.load %arg4[%c0_6, %c0_7] : memref<128x128xf32, #tpu.memory_space<vmem>>, vector<128x128xf32>
    %cst_8 = arith.constant dense<0.000000e+00> : vector<8x128xf32>
    %9 = tpu.matmul %7, %8, %cst_8 {dimension_numbers = #tpu.dot_dimension_numbers<[1], [0], [0], [1], [0, 0, 1, 1], [], []>} : vector<8x128xf32>, vector<128x128xf32>, vector<8x128xf32> -> vector<8x128xf32>
    %c0_9 = arith.constant 0 : index
    %c0_10 = arith.constant 0 : index
    %10 = vector.load %arg5[%c0_9, %c0_10] : memref<1x128xf32, #tpu.memory_space<vmem>>, vector<1x128xf32>
    %11 = vector.broadcast %10 : vector<1x128xf32> to vector<8x128xf32>
    %12 = arith.addf %9, %11 : vector<8x128xf32>
    %13 = arith.addf %0, %12 : vector<8x128xf32>
    %c0_11 = arith.constant 0 : index
    %c0_12 = arith.constant 0 : index
    %14 = vector.load %arg6[%c0_11, %c0_12] : memref<8x128xf32, #tpu.memory_space<vmem>>, vector<8x128xf32>
    tpu.vector_store %arg6[%c0_11, %c0_12], %13 {strides = array<i32>} : memref<8x128xf32, #tpu.memory_space<vmem>>, vector<8x128xf32>,
    return
  }
  func.func @transform_0(%arg0: i32) -> (i32, i32) {
    %c0_i32 = arith.constant 0 : i32
    %c0_i32_0 = arith.constant 0 : i32
    return %arg0, %c0_i32 : i32, i32
  }
  func.func @transform_1(%arg0: i32) -> (i32, i32) {
    %c0_i32 = arith.constant 0 : i32
    %c0_i32_0 = arith.constant 0 : i32
    %c0_i32_1 = arith.constant 0 : i32
    return %c0_i32, %c0_i32_0 : i32, i32
  }
  func.func @transform_2(%arg0: i32) -> (i32, i32) {
    %c0_i32 = arith.constant 0 : i32
    %c0_i32_0 = arith.constant 0 : i32
    %c0_i32_1 = arith.constant 0 : i32
    return %c0_i32, %c0_i32_0 : i32, i32
  }
  func.func @transform_3(%arg0: i32) -> (i32, i32) {
    %c0_i32 = arith.constant 0 : i32
    %c0_i32_0 = arith.constant 0 : i32
    %c0_i32_1 = arith.constant 0 : i32
    return %c0_i32, %c0_i32_0 : i32, i32
  }
  func.func @transform_4(%arg0: i32) -> (i32, i32) {
    %c0_i32 = arith.constant 0 : i32
    %c0_i32_0 = arith.constant 0 : i32
    %c0_i32_1 = arith.constant 0 : i32
    return %c0_i32, %c0_i32_0 : i32, i32
  }
  func.func @transform_5(%arg0: i32) -> (i32, i32) {
    %c0_i32 = arith.constant 0 : i32
    %c0_i32_0 = arith.constant 0 : i32
    return %arg0, %c0_i32 : i32, i32
  }
}

module attributes {stable_mosaic.version = 11 : i64} {
  func.func @_resident_kernel(%arg0: i32, %arg1: memref<8x128xf32, #tpu.memory_space<vmem>>, %arg2: memref<128x128xf32, #tpu.memory_space<vmem>>, %arg3: memref<1x128xf32, #tpu.memory_space<vmem>>, %arg4: memref<128x128xf32, #tpu.memory_space<vmem>>, %arg5: memref<1x128xf32, #tpu.memory_space<vmem>>, %arg6: memref<8x128xf32, #tpu.memory_space<vmem>>) attributes {dimension_semantics = [#tpu.dimension_semantics<parallel>], iteration_bounds = array<i64: 1>, scalar_prefetch = 0 : i64, scratch_operands = 0 : i64, tpu.core_type = #tpu.core_type<tc>, window_params = [{transform_indices = @transform_0, window_bounds = array<i64: 8, 128>}, {pipeline_mode = #tpu.pipeline_mode<synchronous>, transform_indices = @transform_1, window_bounds = array<i64: 128, 128>}, {pipeline_mode = #tpu.pipeline_mode<synchronous>, transform_indices = @transform_2, window_bounds = array<i64: 1, 128>}, {pipeline_mode = #tpu.pipeline_mode<synchronous>, transform_indices = @transform_3, window_bounds = array<i64: 128, 128>}, {pipeline_mode = #tpu.pipeline_mode<synchronous>, transform_indices = @transform_4, window_bounds = array<i64: 1, 128>}, {transform_indices = @transform_5, window_bounds = array<i64: 8, 128>}]} {
    %c0 = arith.constant 0 : index
    %c0_0 = arith.constant 0 : index
    %0 = vector.load %arg1[%c0, %c0_0] : memref<8x128xf32, #tpu.memory_space<vmem>>, vector<8x128xf32>
    %c0_1 = arith.constant 0 : index
    %c0_2 = arith.constant 0 : index
    %1 = vector.load %arg2[%c0_1, %c0_2] : memref<128x128xf32, #tpu.memory_space<vmem>>, vector<128x128xf32>
    %cst = arith.constant dense<0.000000e+00> : vector<8x128xf32>
    %2 = tpu.matmul %0, %1, %cst {dimension_numbers = #tpu.dot_dimension_numbers<[1], [0], [0], [1], [0, 0, 1, 1], [], []>} : vector<8x128xf32>, vector<128x128xf32>, vector<8x128xf32> -> vector<8x128xf32>
    %c0_3 = arith.constant 0 : index
    %c0_4 = arith.constant 0 : index
    %3 = vector.load %arg3[%c0_3, %c0_4] : memref<1x128xf32, #tpu.memory_space<vmem>>, vector<1x128xf32>
    %4 = vector.broadcast %3 : vector<1x128xf32> to vector<8x128xf32>
    %5 = arith.addf %2, %4 : vector<8x128xf32>
    %cst_5 = arith.constant 0.000000e+00 : f32
    %6 = vector.broadcast %cst_5 : f32 to vector<8x128xf32>
    %7 = arith.maximumf %5, %6 : vector<8x128xf32>
    %c0_6 = arith.constant 0 : index
    %c0_7 = arith.constant 0 : index
    %8 = vector.load %arg4[%c0_6, %c0_7] : memref<128x128xf32, #tpu.memory_space<vmem>>, vector<128x128xf32>
    %cst_8 = arith.constant dense<0.000000e+00> : vector<8x128xf32>
    %9 = tpu.matmul %7, %8, %cst_8 {dimension_numbers = #tpu.dot_dimension_numbers<[1], [0], [0], [1], [0, 0, 1, 1], [], []>} : vector<8x128xf32>, vector<128x128xf32>, vector<8x128xf32> -> vector<8x128xf32>
    %c0_9 = arith.constant 0 : index
    %c0_10 = arith.constant 0 : index
    %10 = vector.load %arg5[%c0_9, %c0_10] : memref<1x128xf32, #tpu.memory_space<vmem>>, vector<1x128xf32>
    %11 = vector.broadcast %10 : vector<1x128xf32> to vector<8x128xf32>
    %12 = arith.addf %9, %11 : vector<8x128xf32>
    %13 = arith.addf %0, %12 : vector<8x128xf32>
    %c0_11 = arith.constant 0 : index
    %c0_12 = arith.constant 0 : index
    %14 = vector.load %arg6[%c0_11, %c0_12] : memref<8x128xf32, #tpu.memory_space<vmem>>, vector<8x128xf32>
    tpu.vector_store %arg6[%c0_11, %c0_12], %13 {strides = array<i32>} : memref<8x128xf32, #tpu.memory_space<vmem>>, vector<8x128xf32>,
    return
  }
  func.func @transform_0(%arg0: i32) -> (i32, i32) {
    %c0_i32 = arith.constant 0 : i32
    %c0_i32_0 = arith.constant 0 : i32
    return %arg0, %c0_i32 : i32, i32
  }
  func.func @transform_1(%arg0: i32) -> (i32, i32) {
    %c0_i32 = arith.constant 0 : i32
    %c0_i32_0 = arith.constant 0 : i32
    %c0_i32_1 = arith.constant 0 : i32
    return %c0_i32, %c0_i32_0 : i32, i32
  }
  func.func @transform_2(%arg0: i32) -> (i32, i32) {
    %c0_i32 = arith.constant 0 : i32
    %c0_i32_0 = arith.constant 0 : i32
    %c0_i32_1 = arith.constant 0 : i32
    return %c0_i32, %c0_i32_0 : i32, i32
  }
  func.func @transform_3(%arg0: i32) -> (i32, i32) {
    %c0_i32 = arith.constant 0 : i32
    %c0_i32_0 = arith.constant 0 : i32
    %c0_i32_1 = arith.constant 0 : i32
    return %c0_i32, %c0_i32_0 : i32, i32
  }
  func.func @transform_4(%arg0: i32) -> (i32, i32) {
    %c0_i32 = arith.constant 0 : i32
    %c0_i32_0 = arith.constant 0 : i32
    %c0_i32_1 = arith.constant 0 : i32
    return %c0_i32, %c0_i32_0 : i32, i32
  }
  func.func @transform_5(%arg0: i32) -> (i32, i32) {
    %c0_i32 = arith.constant 0 : i32
    %c0_i32_0 = arith.constant 0 : i32
    return %arg0, %c0_i32 : i32, i32
  }
}

</mosaic_0001>

<bundles_post_ra>
// kernel: tpu_custom_call.1
= control target key start
LH: loop header
LB: loop body
LE: loop exit
PB: predicated region body
PF: predicated region fallthrough
CT: control target
= control target key end

     0   :  { %10 = vsyncpa [#allocation3], 0  ;;  %s638_s0 = inlined_call_operand.hbm [shape: f32[8,128], index: 0, kind: input, shape index: {}]   ;;  %s639_s1 = inlined_call_operand.hbm [shape: f32[128,128], index: 1, kind: input, shape index: {}]   ;;  %s640_s2 = inlined_call_operand.vmem [shape: f32[1,128], index: 2, kind: input, shape index: {}]   ;;  %s641_s3 = inlined_call_operand.hbm [shape: f32[128,128], index: 3, kind: input, shape index: {}]   ;;  %s642_s4 = inlined_call_operand.vmem [shape: f32[1,128], index: 4, kind: input, shape index: {}]   ;;  %s643_s5 = inlined_call_operand.hbm [shape: f32[8,128], index: 5, kind: output, shape index: {}]  }
   0x1   :  { %11 = vsyncpa [#allocation6], 0 }
   0x2   :  { %12 = vsyncpa [#allocation4], 0  ;;  %s523_s18 = smov [#allocation5]   ;;  %s429_s22 = scalar_lea.hbm %s639_s1, 2048 }
   0x3   :  { %s28_s19 = sshll.u32 %s523_s18, 4  ;;  %p430_p0 = scmp.ne.s32.totalorder %s639_s1, %s429_s22  ;;  %s29_s19 = int_to_ptr.vmem [resolvable:$true] %s28_s19 }
   0x4   :  { %p433_p1 = scmp.lt.u32.totalorder %s429_s22, %s639_s1 }
   0x6   :  { %p435_p2 = pnand %p433_p1, %p430_p0 }
   0x8   :  { %438 = shalt.err (!%p435_p2)
}
   0x9   :  { %s439_s27 = scalar_lea.vmem %s29_s19, 2048  ;;  %p444_p4 = scmp.lt.s32.totalorder %s29_s19, %s29_s19 }
   0xa   :  { %p440_p3 = scmp.ne.s32.totalorder %s29_s19, %s439_s27  ;;  %p445_p5 = scmp.lt.s32.totalorder %s439_s27, %s439_s27 }
   0xc   :  { %p446_p6 = por %p445_p5, %p444_p4 }
   0xe   :  { %p447_p7 = pnand %p446_p6, %p440_p3 }
  0x10   :  { %450 = shalt.err (!%p447_p7)
}
  0x11   :  { %s524_s28 = smov 128   ;;  %s525_s29 = smov 8  }
  0x12   :  { %34 = dma.hbm_to_vmem [thread:$0]  %s639_s1, 2048, %s29_s19, [#allocation6], %s524_s28, %s524_s28, %s525_s29  }
  0x13   :  { %s526_s7 = smov [#allocation2]   ;;  %s527_s9 = smov [#allocation7]  }
  0x14   :  { %s19_s8 = sshll.u32 %s526_s7, 4  ;;  %s42_s10 = sshll.u32 %s527_s9, 4  ;;  %s20_s8 = int_to_ptr.vmem [resolvable:$true] %s19_s8  ;;  %s43_s10 = int_to_ptr.vmem [resolvable:$true] %s42_s10 }
  0x15   :  { %s451_s13 = scalar_lea.hbm %s638_s0, 128 }
  0x16   :  { %p452_p8 = scmp.ne.s32.totalorder %s638_s0, %s451_s13  ;;  %p455_p9 = scmp.lt.u32.totalorder %s451_s13, %s638_s0 }
  0x18   :  { %p457_p10 = pnand %p455_p9, %p452_p8 }
  0x1a   :  { %460 = shalt.err (!%p457_p10)
}
  0x1b   :  { %s461_s1 = scalar_lea.vmem %s20_s8, 128  ;;  %p466_p12 = scmp.lt.s32.totalorder %s20_s8, %s20_s8 }
  0x1c   :  { %p462_p11 = scmp.ne.s32.totalorder %s20_s8, %s461_s1  ;;  %p467_p13 = scmp.lt.s32.totalorder %s461_s1, %s461_s1 }
  0x1e   :  { %p468_p0 = por %p467_p13, %p466_p12 }
  0x20   :  { %p469_p1 = pnand %p468_p0, %p462_p11 }
  0x22   :  { %472 = shalt.err (!%p469_p1)
}
  0x23   :  { %22 = dma.hbm_to_vmem [thread:$0]  %s638_s0, 128, %s20_s8, [#allocation3]  }
  0x24   :  { %s473_s22 = scalar_lea.hbm %s641_s3, 2048 }
  0x25   :  { %p474_p2 = scmp.ne.s32.totalorder %s641_s3, %s473_s22  ;;  %p477_p3 = scmp.lt.u32.totalorder %s473_s22, %s641_s3 }
  0x27   :  { %p479_p4 = pnand %p477_p3, %p474_p2 }
  0x29   :  { %482 = shalt.err (!%p479_p4)
}
  0x2a   :  { %s483_s27 = scalar_lea.vmem %s43_s10, 2048  ;;  %p488_p6 = scmp.lt.s32.totalorder %s43_s10, %s43_s10 }
  0x2b   :  { %p484_p5 = scmp.ne.s32.totalorder %s43_s10, %s483_s27  ;;  %p489_p7 = scmp.lt.s32.totalorder %s483_s27, %s483_s27 }
  0x2d   :  { %p490_p8 = por %p489_p7, %p488_p6 }
  0x2f   :  { %p491_p9 = pnand %p490_p8, %p484_p5 }
  0x31   :  { %494 = shalt.err (!%p491_p9)
}
  0x32   :  { %48 = dma.hbm_to_vmem [thread:$0]  %s641_s3, 2048, %s43_s10, [#allocation6], %s524_s28, %s524_s28, %s525_s29  }
  0x33   :  { %517 = dma.done.wait [#allocation3], 128  }
  0x34   :  { %518 = vsyncadd [#allocation3], 4294967168 }
  0x35   :  { %519 = dma.done.wait [#allocation6], 4096  }
  0x36   :  { %520 = vsyncadd [#allocation6], 4294963200  ;;  %v528_v0 = vmov 0.0|0.0   ;;  %vm529_vm0 = vmmov 0   ;;  %v530_v1 = vmov 0.0   ;;  %v61_v2 = vld [vmem:[#allocation5] sm:$0xff] }
  0x37   :  { %372 = vmatprep.subr.bf16.mxu0 %v528_v0  ;;  %334 = vmatprep.mubr.msk.f32.mxu0 %vm529_vm0, %v530_v1  ;;  %v62_v3 = vld [vmem:[#allocation5 + $0x8] sm:$0xff]  ;;  %v63_v4 = vld [vmem:[#allocation5 + $0x10] sm:$0xff]  ;;  %v64_v6 = vld [vmem:[#allocation5 + $0x18] sm:$0xff]  ;;  %s531_s7 = smov [#allocation8]  }
  0x38   :  { %396 = vmatprep.subr.bf16.mxu1 %v528_v0  ;;  %369 = vmatprep.mubr.msk.f32.mxu1 %vm529_vm0, %v530_v1  ;;  %v373_v5 = vpack.c.bf16 %v62_v3, %v61_v2  ;;  %v376_v7 = vpack.c.bf16 %v64_v6, %v63_v4  ;;  %v65_v8 = vld [vmem:[#allocation5 + $0x20] sm:$0xff]  ;;  %v66_v9 = vld [vmem:[#allocation5 + $0x28] sm:$0xff]  ;;  %v157_v12 = vld [vmem:[#allocation7 + $0x10] sm:$0xff]  ;;  %s256_s8 = sshll.u32 %s531_s7, 4  ;;  %s257_s8 = int_to_ptr.vmem [resolvable:$true] %s256_s8 }
  0x39   :  { %v155_v10 = vld [vmem:[#allocation7] sm:$0xff]  ;;  %v156_v11 = vld [vmem:[#allocation7 + $0x8] sm:$0xff]  ;;  %v158_v13 = vld [vmem:[#allocation7 + $0x18] sm:$0xff]  ;;  %v379_v14 = vpack.c.bf16 %v66_v9, %v65_v8  ;;  %s495_s9 = scalar_lea.vmem %s257_s8, 128  ;;  %p500_p11 = scmp.lt.s32.totalorder %s257_s8, %s257_s8 }
  0x3a   :  { %374 = vmatpush3.bf16.msra.mxu0 %v373_v5  ;;  %v397_v15 = vpack.c.bf16 %v156_v11, %v155_v10  ;;  %v67_v16 = vld [vmem:[#allocation5 + $0x30] sm:$0xff]  ;;  %v68_v17 = vld [vmem:[#allocation5 + $0x38] sm:$0xff]  ;;  %v400_v18 = vpack.c.bf16 %v158_v13, %v157_v12  ;;  %v159_v19 = vld [vmem:[#allocation7 + $0x20] sm:$0xff]  ;;  %p496_p10 = scmp.ne.s32.totalorder %s257_s8, %s495_s9  ;;  %p501_p12 = scmp.lt.s32.totalorder %s495_s9, %s495_s9 }
  0x3b   :  { %375 = vmatprep.subr.bf16.mxu0 %v528_v0  ;;  %v160_v20 = vld [vmem:[#allocation7 + $0x28] sm:$0xff]  ;;  %v382_v21 = vpack.c.bf16 %v68_v17, %v67_v16  ;;  %v69_v22 = vld [vmem:[#allocation5 + $0x40] sm:$0xff]  ;;  %v161_v25 = vld [vmem:[#allocation7 + $0x30] sm:$0xff] }
  0x3c   :  { %398 = vmatpush3.bf16.msra.mxu1 %v397_v15  ;;  %v70_v23 = vld [vmem:[#allocation5 + $0x48] sm:$0xff]  ;;  %v403_v24 = vpack.c.bf16 %v160_v20, %v159_v19  ;;  %v162_v26 = vld [vmem:[#allocation7 + $0x38] sm:$0xff]  ;;  %v71_v28 = vld [vmem:[#allocation5 + $0x50] sm:$0xff]  ;;  %p502_p13 = por %p501_p12, %p500_p11 }
  0x3d   :  { %399 = vmatprep.subr.bf16.mxu1 %v528_v0  ;;  %v385_v27 = vpack.c.bf16 %v70_v23, %v69_v22  ;;  %v72_v29 = vld [vmem:[#allocation5 + $0x58] sm:$0xff]  ;;  %v406_v30 = vpack.c.bf16 %v162_v26, %v161_v25  ;;  %v163_v31 = vld [vmem:[#allocation7 + $0x40] sm:$0xff]  ;;  %v164_v32 = vld [vmem:[#allocation7 + $0x48] sm:$0xff] }
  0x3e   :  { %377 = vmatpush3.bf16.msra.mxu0 %v376_v7  ;;  %v388_v33 = vpack.c.bf16 %v72_v29, %v71_v28  ;;  %v73_v34 = vld [vmem:[#allocation5 + $0x60] sm:$0xff]  ;;  %v74_v35 = vld [vmem:[#allocation5 + $0x68] sm:$0xff]  ;;  %v409_v36 = vpack.c.bf16 %v164_v32, %v163_v31  ;;  %v165_v37 = vld [vmem:[#allocation7 + $0x50] sm:$0xff]  ;;  %p503_p0 = pnand %p502_p13, %p496_p10 }
  0x3f   :  { %378 = vmatprep.subr.bf16.mxu0 %v528_v0  ;;  %v166_v38 = vld [vmem:[#allocation7 + $0x58] sm:$0xff]  ;;  %v391_v39 = vpack.c.bf16 %v74_v35, %v73_v34  ;;  %v75_v40 = vld [vmem:[#allocation5 + $0x70] sm:$0xff]  ;;  %v167_v43 = vld [vmem:[#allocation7 + $0x60] sm:$0xff] }
  0x40   :  { %401 = vmatpush3.bf16.msra.mxu1 %v400_v18  ;;  %v76_v41 = vld [vmem:[#allocation5 + $0x78] sm:$0xff]  ;;  %v412_v42 = vpack.c.bf16 %v166_v38, %v165_v37  ;;  %v168_v44 = vld [vmem:[#allocation7 + $0x68] sm:$0xff]  ;;  %v169_v48 = vld [vmem:[#allocation7 + $0x70] sm:$0xff] }
  0x41   :  { %402 = vmatprep.subr.bf16.mxu1 %v528_v0  ;;  %v394_v45 = vpack.c.bf16 %v76_v41, %v75_v40  ;;  %v415_v46 = vpack.c.bf16 %v168_v44, %v167_v43  ;;  %v60_v47 = vld [vmem:[#allocation2] sm:$0xff] }
  0x42   :  { %380 = vmatpush3.bf16.msra.mxu0 %v379_v14  ;;  %v170_v49 = vld [vmem:[#allocation7 + $0x78] sm:$0xff] }
  0x43   :  { %381 = vmatprep.subr.bf16.mxu0 %v528_v0  ;;  %v418_v50 = vpack.c.bf16 %v170_v49, %v169_v48  ;;  %v266_v51 = vld [vmem:[%s640_s2] ss:$0 sm:$0xff] }
  0x44   :  { %404 = vmatpush3.bf16.msra.mxu1 %v403_v24  ;;  %v267_v56 = vld [vmem:[%s642_s4] ss:$0 sm:$0xff] }
  0x45   :  { %405 = vmatprep.subr.bf16.mxu1 %v528_v0 }
  0x46   :  { %383 = vmatpush3.bf16.msra.mxu0 %v382_v21 }
  0x47   :  { %384 = vmatprep.subr.bf16.mxu0 %v528_v0 }
  0x48   :  { %407 = vmatpush3.bf16.msra.mxu1 %v406_v30 }
  0x49   :  { %408 = vmatprep.subr.bf16.mxu1 %v528_v0 }
  0x4a   :  { %386 = vmatpush3.bf16.msra.mxu0 %v385_v27 }
  0x4b   :  { %387 = vmatprep.subr.bf16.mxu0 %v528_v0 }
  0x4c   :  { %410 = vmatpush3.bf16.msra.mxu1 %v409_v36 }
  0x4d   :  { %411 = vmatprep.subr.bf16.mxu1 %v528_v0 }
  0x4e   :  { %389 = vmatpush3.bf16.msra.mxu0 %v388_v33 }
  0x4f   :  { %390 = vmatprep.subr.bf16.mxu0 %v528_v0 }
  0x50   :  { %413 = vmatpush3.bf16.msra.mxu1 %v412_v42 }
  0x51   :  { %414 = vmatprep.subr.bf16.mxu1 %v528_v0 }
  0x52   :  { %392 = vmatpush3.bf16.msra.mxu0 %v391_v39 }
  0x53   :  { %393 = vmatprep.subr.bf16.mxu0 %v528_v0 }
  0x54   :  { %416 = vmatpush3.bf16.msra.mxu1 %v415_v46 }
  0x55   :  { %417 = vmatprep.subr.bf16.mxu1 %v528_v0 }
  0x56   :  { %395 = vmatpush3.bf16.msra.mxu0 %v394_v45 }
  0x58   :  { %419 = vmatpush3.bf16.msra.mxu1 %v418_v50 }
  0x59   :  { %335 = vmatmul.mubr.f32.vlgmr.msra.gmra.mrb[0].mxu0 %v60_v47 }
 0x12c   :  { %v150_v52 = vpop.f32.mrb[0].mxu0 }
 0x12d   :  { %v151_v53 = vadd.f32 %v266_v51, %v150_v52  ;;  %v336_v54 = vpop.f32.mrb[1].mxu0 }
 0x12f   :  { %v154_v55 = vmax.f32 %v151_v53, 0.0 }
 0x131   :  { %370 = vmatmul.mubr.f32.vlgmr.msra.gmra.mrb[0].mxu1 %v154_v55 }
 0x204   :  { %v244_v57 = vpop.f32.mrb[0].mxu1 }
 0x205   :  { %v245_v58 = vadd.f32 %v267_v56, %v244_v57  ;;  %v371_v59 = vpop.f32.mrb[1].mxu1 }
 0x207   :  { %v248_v60 = vadd.f32 %v245_v58, %v60_v47 }
 0x209   :  { %249 = vst [vmem:[#allocation8] sm:$0xff] %v248_v60 }
 0x20a   :  { %506 = shalt.err (!%p503_p0)
}
 0x20b   :  { %s507_s11 = scalar_lea.hbm %s643_s5, 128 }
 0x20c   :  { %p508_p1 = scmp.ne.s32.totalorder %s643_s5, %s507_s11  ;;  %p511_p2 = scmp.lt.u32.totalorder %s507_s11, %s643_s5 }
 0x20e   :  { %p513_p3 = pnand %p511_p2, %p508_p1 }
 0x210   :  { %516 = shalt.err (!%p513_p3)
}
 0x211   :  { %259 = dma.vmem_to_hbm [thread:$0]  %s257_s8, 128, %s643_s5, [#allocation4]  }
 0x212   :  { %521 = dma.done.wait [#allocation4], 128  }
 0x213   :  { %522 = vsyncadd [#allocation4], 4294967168 }
 0x214   :  { %263 = vsyncpa [#allocation3], 1 }
 0x215   :  { %264 = vsyncpa [#allocation6], 1 }
 0x216   :  { %265 = vsyncpa [#allocation4], 1 }

// kernel: tpu_custom_call.1
= control target key start
LH: loop header
LB: loop body
LE: loop exit
PB: predicated region body
PF: predicated region fallthrough
CT: control target
= control target key end

     0   :  { %10 = vsyncpa [#allocation3], 0  ;;  %s638_s0 = inlined_call_operand.hbm [shape: f32[8,128], index: 0, kind: input, shape index: {}]   ;;  %s639_s1 = inlined_call_operand.hbm [shape: f32[128,128], index: 1, kind: input, shape index: {}]   ;;  %s640_s2 = inlined_call_operand.vmem [shape: f32[1,128], index: 2, kind: input, shape index: {}]   ;;  %s641_s3 = inlined_call_operand.hbm [shape: f32[128,128], index: 3, kind: input, shape index: {}]   ;;  %s642_s4 = inlined_call_operand.vmem [shape: f32[1,128], index: 4, kind: input, shape index: {}]   ;;  %s643_s5 = inlined_call_operand.hbm [shape: f32[8,128], index: 5, kind: output, shape index: {}]  }
   0x1   :  { %11 = vsyncpa [#allocation6], 0 }
   0x2   :  { %12 = vsyncpa [#allocation4], 0  ;;  %s523_s18 = smov [#allocation5]   ;;  %s429_s22 = scalar_lea.hbm %s639_s1, 2048 }
   0x3   :  { %s28_s19 = sshll.u32 %s523_s18, 4  ;;  %p430_p0 = scmp.ne.s32.totalorder %s639_s1, %s429_s22  ;;  %s29_s19 = int_to_ptr.vmem [resolvable:$true] %s28_s19 }
   0x4   :  { %p433_p1 = scmp.lt.u32.totalorder %s429_s22, %s639_s1 }
   0x6   :  { %p435_p2 = pnand %p433_p1, %p430_p0 }
   0x8   :  { %438 = shalt.err (!%p435_p2)
}
   0x9   :  { %s439_s27 = scalar_lea.vmem %s29_s19, 2048  ;;  %p444_p4 = scmp.lt.s32.totalorder %s29_s19, %s29_s19 }
   0xa   :  { %p440_p3 = scmp.ne.s32.totalorder %s29_s19, %s439_s27  ;;  %p445_p5 = scmp.lt.s32.totalorder %s439_s27, %s439_s27 }
   0xc   :  { %p446_p6 = por %p445_p5, %p444_p4 }
   0xe   :  { %p447_p7 = pnand %p446_p6, %p440_p3 }
  0x10   :  { %450 = shalt.err (!%p447_p7)
}
  0x11   :  { %s524_s28 = smov 128   ;;  %s525_s29 = smov 8  }
  0x12   :  { %34 = dma.hbm_to_vmem [thread:$0]  %s639_s1, 2048, %s29_s19, [#allocation6], %s524_s28, %s524_s28, %s525_s29  }
  0x13   :  { %s526_s7 = smov [#allocation2]   ;;  %s527_s9 = smov [#allocation7]  }
  0x14   :  { %s19_s8 = sshll.u32 %s526_s7, 4  ;;  %s42_s10 = sshll.u32 %s527_s9, 4  ;;  %s20_s8 = int_to_ptr.vmem [resolvable:$true] %s19_s8  ;;  %s43_s10 = int_to_ptr.vmem [resolvable:$true] %s42_s10 }
  0x15   :  { %s451_s13 = scalar_lea.hbm %s638_s0, 128 }
  0x16   :  { %p452_p8 = scmp.ne.s32.totalorder %s638_s0, %s451_s13  ;;  %p455_p9 = scmp.lt.u32.totalorder %s451_s13, %s638_s0 }
  0x18   :  { %p457_p10 = pnand %p455_p9, %p452_p8 }
  0x1a   :  { %460 = shalt.err (!%p457_p10)
}
  0x1b   :  { %s461_s1 = scalar_lea.vmem %s20_s8, 128  ;;  %p466_p12 = scmp.lt.s32.totalorder %s20_s8, %s20_s8 }
  0x1c   :  { %p462_p11 = scmp.ne.s32.totalorder %s20_s8, %s461_s1  ;;  %p467_p13 = scmp.lt.s32.totalorder %s461_s1, %s461_s1 }
  0x1e   :  { %p468_p0 = por %p467_p13, %p466_p12 }
  0x20   :  { %p469_p1 = pnand %p468_p0, %p462_p11 }
  0x22   :  { %472 = shalt.err (!%p469_p1)
}
  0x23   :  { %22 = dma.hbm_to_vmem [thread:$0]  %s638_s0, 128, %s20_s8, [#allocation3]  }
  0x24   :  { %s473_s22 = scalar_lea.hbm %s641_s3, 2048 }
  0x25   :  { %p474_p2 = scmp.ne.s32.totalorder %s641_s3, %s473_s22  ;;  %p477_p3 = scmp.lt.u32.totalorder %s473_s22, %s641_s3 }
  0x27   :  { %p479_p4 = pnand %p477_p3, %p474_p2 }
  0x29   :  { %482 = shalt.err (!%p479_p4)
}
  0x2a   :  { %s483_s27 = scalar_lea.vmem %s43_s10, 2048  ;;  %p488_p6 = scmp.lt.s32.totalorder %s43_s10, %s43_s10 }
  0x2b   :  { %p484_p5 = scmp.ne.s32.totalorder %s43_s10, %s483_s27  ;;  %p489_p7 = scmp.lt.s32.totalorder %s483_s27, %s483_s27 }
  0x2d   :  { %p490_p8 = por %p489_p7, %p488_p6 }
  0x2f   :  { %p491_p9 = pnand %p490_p8, %p484_p5 }
  0x31   :  { %494 = shalt.err (!%p491_p9)
}
  0x32   :  { %48 = dma.hbm_to_vmem [thread:$0]  %s641_s3, 2048, %s43_s10, [#allocation6], %s524_s28, %s524_s28, %s525_s29  }
  0x33   :  { %517 = dma.done.wait [#allocation3], 128  }
  0x34   :  { %518 = vsyncadd [#allocation3], 4294967168 }
  0x35   :  { %519 = dma.done.wait [#allocation6], 4096  }
  0x36   :  { %520 = vsyncadd [#allocation6], 4294963200  ;;  %v528_v0 = vmov 0.0|0.0   ;;  %vm529_vm0 = vmmov 0   ;;  %v530_v1 = vmov 0.0   ;;  %v61_v2 = vld [vmem:[#allocation5] sm:$0xff] }
  0x37   :  { %372 = vmatprep.subr.bf16.mxu0 %v528_v0  ;;  %334 = vmatprep.mubr.msk.f32.mxu0 %vm529_vm0, %v530_v1  ;;  %v62_v3 = vld [vmem:[#allocation5 + $0x8] sm:$0xff]  ;;  %v63_v4 = vld [vmem:[#allocation5 + $0x10] sm:$0xff]  ;;  %v64_v6 = vld [vmem:[#allocation5 + $0x18] sm:$0xff]  ;;  %s531_s7 = smov [#allocation8]  }
  0x38   :  { %396 = vmatprep.subr.bf16.mxu1 %v528_v0  ;;  %369 = vmatprep.mubr.msk.f32.mxu1 %vm529_vm0, %v530_v1  ;;  %v373_v5 = vpack.c.bf16 %v62_v3, %v61_v2  ;;  %v376_v7 = vpack.c.bf16 %v64_v6, %v63_v4  ;;  %v65_v8 = vld [vmem:[#allocation5 + $0x20] sm:$0xff]  ;;  %v66_v9 = vld [vmem:[#allocation5 + $0x28] sm:$0xff]  ;;  %v157_v12 = vld [vmem:[#allocation7 + $0x10] sm:$0xff]  ;;  %s256_s8 = sshll.u32 %s531_s7, 4  ;;  %s257_s8 = int_to_ptr.vmem [resolvable:$true] %s256_s8 }
  0x39   :  { %v155_v10 = vld [vmem:[#allocation7] sm:$0xff]  ;;  %v156_v11 = vld [vmem:[#allocation7 + $0x8] sm:$0xff]  ;;  %v158_v13 = vld [vmem:[#allocation7 + $0x18] sm:$0xff]  ;;  %v379_v14 = vpack.c.bf16 %v66_v9, %v65_v8  ;;  %s495_s9 = scalar_lea.vmem %s257_s8, 128  ;;  %p500_p11 = scmp.lt.s32.totalorder %s257_s8, %s257_s8 }
  0x3a   :  { %374 = vmatpush3.bf16.msra.mxu0 %v373_v5  ;;  %v397_v15 = vpack.c.bf16 %v156_v11, %v155_v10  ;;  %v67_v16 = vld [vmem:[#allocation5 + $0x30] sm:$0xff]  ;;  %v68_v17 = vld [vmem:[#allocation5 + $0x38] sm:$0xff]  ;;  %v400_v18 = vpack.c.bf16 %v158_v13, %v157_v12  ;;  %v159_v19 = vld [vmem:[#allocation7 + $0x20] sm:$0xff]  ;;  %p496_p10 = scmp.ne.s32.totalorder %s257_s8, %s495_s9  ;;  %p501_p12 = scmp.lt.s32.totalorder %s495_s9, %s495_s9 }
  0x3b   :  { %375 = vmatprep.subr.bf16.mxu0 %v528_v0  ;;  %v160_v20 = vld [vmem:[#allocation7 + $0x28] sm:$0xff]  ;;  %v382_v21 = vpack.c.bf16 %v68_v17, %v67_v16  ;;  %v69_v22 = vld [vmem:[#allocation5 + $0x40] sm:$0xff]  ;;  %v161_v25 = vld [vmem:[#allocation7 + $0x30] sm:$0xff] }
  0x3c   :  { %398 = vmatpush3.bf16.msra.mxu1 %v397_v15  ;;  %v70_v23 = vld [vmem:[#allocation5 + $0x48] sm:$0xff]  ;;  %v403_v24 = vpack.c.bf16 %v160_v20, %v159_v19  ;;  %v162_v26 = vld [vmem:[#allocation7 + $0x38] sm:$0xff]  ;;  %v71_v28 = vld [vmem:[#allocation5 + $0x50] sm:$0xff]  ;;  %p502_p13 = por %p501_p12, %p500_p11 }
  0x3d   :  { %399 = vmatprep.subr.bf16.mxu1 %v528_v0  ;;  %v385_v27 = vpack.c.bf16 %v70_v23, %v69_v22  ;;  %v72_v29 = vld [vmem:[#allocation5 + $0x58] sm:$0xff]  ;;  %v406_v30 = vpack.c.bf16 %v162_v26, %v161_v25  ;;  %v163_v31 = vld [vmem:[#allocation7 + $0x40] sm:$0xff]  ;;  %v164_v32 = vld [vmem:[#allocation7 + $0x48] sm:$0xff] }
  0x3e   :  { %377 = vmatpush3.bf16.msra.mxu0 %v376_v7  ;;  %v388_v33 = vpack.c.bf16 %v72_v29, %v71_v28  ;;  %v73_v34 = vld [vmem:[#allocation5 + $0x60] sm:$0xff]  ;;  %v74_v35 = vld [vmem:[#allocation5 + $0x68] sm:$0xff]  ;;  %v409_v36 = vpack.c.bf16 %v164_v32, %v163_v31  ;;  %v165_v37 = vld [vmem:[#allocation7 + $0x50] sm:$0xff]  ;;  %p503_p0 = pnand %p502_p13, %p496_p10 }
  0x3f   :  { %378 = vmatprep.subr.bf16.mxu0 %v528_v0  ;;  %v166_v38 = vld [vmem:[#allocation7 + $0x58] sm:$0xff]  ;;  %v391_v39 = vpack.c.bf16 %v74_v35, %v73_v34  ;;  %v75_v40 = vld [vmem:[#allocation5 + $0x70] sm:$0xff]  ;;  %v167_v43 = vld [vmem:[#allocation7 + $0x60] sm:$0xff] }
  0x40   :  { %401 = vmatpush3.bf16.msra.mxu1 %v400_v18  ;;  %v76_v41 = vld [vmem:[#allocation5 + $0x78] sm:$0xff]  ;;  %v412_v42 = vpack.c.bf16 %v166_v38, %v165_v37  ;;  %v168_v44 = vld [vmem:[#allocation7 + $0x68] sm:$0xff]  ;;  %v169_v48 = vld [vmem:[#allocation7 + $0x70] sm:$0xff] }
  0x41   :  { %402 = vmatprep.subr.bf16.mxu1 %v528_v0  ;;  %v394_v45 = vpack.c.bf16 %v76_v41, %v75_v40  ;;  %v415_v46 = vpack.c.bf16 %v168_v44, %v167_v43  ;;  %v60_v47 = vld [vmem:[#allocation2] sm:$0xff] }
  0x42   :  { %380 = vmatpush3.bf16.msra.mxu0 %v379_v14  ;;  %v170_v49 = vld [vmem:[#allocation7 + $0x78] sm:$0xff] }
  0x43   :  { %381 = vmatprep.subr.bf16.mxu0 %v528_v0  ;;  %v418_v50 = vpack.c.bf16 %v170_v49, %v169_v48  ;;  %v266_v51 = vld [vmem:[%s640_s2] ss:$0 sm:$0xff] }
  0x44   :  { %404 = vmatpush3.bf16.msra.mxu1 %v403_v24  ;;  %v267_v56 = vld [vmem:[%s642_s4] ss:$0 sm:$0xff] }
  0x45   :  { %405 = vmatprep.subr.bf16.mxu1 %v528_v0 }
  0x46   :  { %383 = vmatpush3.bf16.msra.mxu0 %v382_v21 }
  0x47   :  { %384 = vmatprep.subr.bf16.mxu0 %v528_v0 }
  0x48   :  { %407 = vmatpush3.bf16.msra.mxu1 %v406_v30 }
  0x49   :  { %408 = vmatprep.subr.bf16.mxu1 %v528_v0 }
  0x4a   :  { %386 = vmatpush3.bf16.msra.mxu0 %v385_v27 }
  0x4b   :  { %387 = vmatprep.subr.bf16.mxu0 %v528_v0 }
  0x4c   :  { %410 = vmatpush3.bf16.msra.mxu1 %v409_v36 }
  0x4d   :  { %411 = vmatprep.subr.bf16.mxu1 %v528_v0 }
  0x4e   :  { %389 = vmatpush3.bf16.msra.mxu0 %v388_v33 }
  0x4f   :  { %390 = vmatprep.subr.bf16.mxu0 %v528_v0 }
  0x50   :  { %413 = vmatpush3.bf16.msra.mxu1 %v412_v42 }
  0x51   :  { %414 = vmatprep.subr.bf16.mxu1 %v528_v0 }
  0x52   :  { %392 = vmatpush3.bf16.msra.mxu0 %v391_v39 }
  0x53   :  { %393 = vmatprep.subr.bf16.mxu0 %v528_v0 }
  0x54   :  { %416 = vmatpush3.bf16.msra.mxu1 %v415_v46 }
  0x55   :  { %417 = vmatprep.subr.bf16.mxu1 %v528_v0 }
  0x56   :  { %395 = vmatpush3.bf16.msra.mxu0 %v394_v45 }
  0x58   :  { %419 = vmatpush3.bf16.msra.mxu1 %v418_v50 }
  0x59   :  { %335 = vmatmul.mubr.f32.vlgmr.msra.gmra.mrb[0].mxu0 %v60_v47 }
 0x12c   :  { %v150_v52 = vpop.f32.mrb[0].mxu0 }
 0x12d   :  { %v151_v53 = vadd.f32 %v266_v51, %v150_v52  ;;  %v336_v54 = vpop.f32.mrb[1].mxu0 }
 0x12f   :  { %v154_v55 = vmax.f32 %v151_v53, 0.0 }
 0x131   :  { %370 = vmatmul.mubr.f32.vlgmr.msra.gmra.mrb[0].mxu1 %v154_v55 }
 0x204   :  { %v244_v57 = vpop.f32.mrb[0].mxu1 }
 0x205   :  { %v245_v58 = vadd.f32 %v267_v56, %v244_v57  ;;  %v371_v59 = vpop.f32.mrb[1].mxu1 }
 0x207   :  { %v248_v60 = vadd.f32 %v245_v58, %v60_v47 }
 0x209   :  { %249 = vst [vmem:[#allocation8] sm:$0xff] %v248_v60 }
 0x20a   :  { %506 = shalt.err (!%p503_p0)
}
 0x20b   :  { %s507_s11 = scalar_lea.hbm %s643_s5, 128 }
 0x20c   :  { %p508_p1 = scmp.ne.s32.totalorder %s643_s5, %s507_s11  ;;  %p511_p2 = scmp.lt.u32.totalorder %s507_s11, %s643_s5 }
 0x20e   :  { %p513_p3 = pnand %p511_p2, %p508_p1 }
 0x210   :  { %516 = shalt.err (!%p513_p3)
}
 0x211   :  { %259 = dma.vmem_to_hbm [thread:$0]  %s257_s8, 128, %s643_s5, [#allocation4]  }
 0x212   :  { %521 = dma.done.wait [#allocation4], 128  }
 0x213   :  { %522 = vsyncadd [#allocation4], 4294967168 }
 0x214   :  { %263 = vsyncpa [#allocation3], 1 }
 0x215   :  { %264 = vsyncpa [#allocation6], 1 }
 0x216   :  { %265 = vsyncpa [#allocation4], 1 }

</bundles_post_ra>
